<compile_context>
chip_gen: v6e
topology: v6e:2x2x1
jax: 0.10.0
libtpu: 0.0.40
codegen_flags: <defaults>
</compile_context>

<pallas_src>
import functools
import math

import jax
import jax.numpy as jnp
from jax.experimental import pallas as pl
from jax.experimental.pallas import tpu as pltpu


def _layernorm_kernel(x_ref, wb_ref, o_ref, *, eps: float):
    # x_ref: (TM, D) tile of rows; wb_ref: (2, D) fused f32 [weight; bias].
    x = x_ref[...].astype(jnp.float32)
    # TODO(synk): PyTorch raises on NaN/Inf inputs; no clean in-kernel raise on TPU.
    mean = jnp.mean(x, axis=-1, keepdims=True)
    xc = x - mean
    var = jnp.mean(xc * xc, axis=-1, keepdims=True)  # unbiased=False
    inv_std = jax.lax.rsqrt(var + eps)               # EUP slot, effectively free
    w = wb_ref[0:1, :]
    b = wb_ref[1:2, :]
    o_ref[...] = (xc * inv_std * w + b).astype(o_ref.dtype)


def _sublane_multiple(itemsize: int) -> int:
    # Min second-to-last tile multiple for packed dtypes: f32->8, bf16->16, i8->32.
    return {4: 8, 2: 16, 1: 32}.get(itemsize, 8)


def _tpu_caps():
    """Best-effort (vmem_bytes, num_tensorcores) for the local chip."""
    vmem_bytes = 64 << 20   # conservative default (v7x per-TC VMEM)
    num_tc = 0
    kind = ""
    try:
        kind = jax.devices()[0].device_kind.lower()
    except Exception:
        pass
    try:
        info = pltpu.get_tpu_info()
        for attr in ("vmem_capacity_bytes", "vmem_bytes"):
            v = getattr(info, attr, None)
            if v:
                vmem_bytes = int(v)
                break
        for attr in ("num_cores", "tensorcores_per_chip", "num_tensorcores",
                     "cores_per_chip"):
            v = getattr(info, attr, None)
            if v:
                num_tc = int(v)
                break
    except Exception:
        pass
    if num_tc <= 0:
        # Heuristic for the target generations: v7x has 2 TCs/chip (and 64 MiB
        # per-TC VMEM), v5e/v6e have 1 TC (128 MiB VMEM).
        num_tc = 2 if ("v7" in kind or vmem_bytes <= (64 << 20)) else 1
    return vmem_bytes, num_tc


def _choose_block_rows(rows: int, dim: int, in_itemsize: int, out_itemsize: int,
                       vmem_bytes: int, num_tc: int) -> int:
    sub = _sublane_multiple(in_itemsize)
    row_bytes_in = dim * in_itemsize
    row_bytes_out = dim * out_itemsize
    # Per-row pipeline footprint: double-buffered in + out tiles plus ~3x f32
    # working set for the block (x, xc, intermediates for packed dtypes).
    per_row_pipeline = 2 * (row_bytes_in + row_bytes_out) + 3 * dim * 4
    # Cap the tile by bytes (not rows): use ~70% of physical VMEM for the
    # pipeline, leaving headroom for params / compiler scratch.
    budget = int(vmem_bytes * 0.7)
    tm_vmem = max(budget // max(per_row_pipeline, 1), sub)
    # Target 4-6 MiB of input per block: amortizes the ~0.35 us grid-step
    # overhead even at v7x's 3.2 TB/s HBM while staying inside the budget.
    target_tile_bytes = (6 << 20) if vmem_bytes >= (96 << 20) else (4 << 20)
    tm_target = max(target_tile_bytes // max(row_bytes_in, 1), sub)
    tm = min(tm_vmem, tm_target)
    tm = (tm // sub) * sub
    # Don't tile beyond the (sublane-rounded) problem size.
    rows_rounded = pl.cdiv(rows, sub) * sub
    tm = min(tm, rows_rounded)
    # Megacore: want >= 2 grid steps per TensorCore so each core's
    # double-buffered pipeline reaches steady state.  Skip entirely on
    # single-TC chips (v5e/v6e): shrinking there only adds step overhead.
    if num_tc > 1 and rows_rounded > sub:
        min_steps = 2 * num_tc
        tm_for_steps = pl.cdiv(pl.cdiv(rows_rounded, min_steps), sub) * sub
        tm = min(tm, max(tm_for_steps, sub))
    return max(tm, sub)


def layer_norm(x, weight, bias, eps: float = 1e-5, block_rows: int | None = None):
    orig_dtype = x.dtype

    # Mirror the reference module exactly: a 2D input is unsqueezed to 3D and
    # the 3D result is returned (the module never squeezes back).
    if x.ndim == 2:
        x = x[None, ...]
    out_shape_full = x.shape

    dim = weight.shape[0]
    if x.shape[-1] != dim:
        raise ValueError(f"Expected last dimension to be {dim}, got {x.shape[-1]}")

    rows = math.prod(x.shape[:-1])
    x2d = x.reshape(rows, dim)

    in_itemsize = jnp.dtype(x2d.dtype).itemsize
    out_itemsize = jnp.dtype(orig_dtype).itemsize
    sub = _sublane_multiple(in_itemsize)

    vmem_bytes, num_tc = _tpu_caps()

    if block_rows is None:
        tm = _choose_block_rows(rows, dim, in_itemsize, out_itemsize,
                                vmem_bytes, num_tc)
    else:
        tm = max((block_rows // sub) * sub, sub)
        tm = min(tm, pl.cdiv(rows, sub) * sub)

    grid = (pl.cdiv(rows, tm),)

    # Fused, resident weight/bias: one (2, D) f32 input, one DMA, constant
    # index_map.  Pre-casting to f32 here removes a per-step VPU cast and
    # avoids silent promotion surprises if weight/bias dtypes differ.
    wb = jnp.stack([weight.astype(jnp.float32), bias.astype(jnp.float32)], axis=0)

    # Scoped-VMEM budget: double-buffered in/out tiles + ~3x f32 working set +
    # params + headroom, capped generation-aware (v7x: 64 MiB physical;
    # v5e/v6e: 128 MiB).
    bytes_tile_in = tm * dim * in_itemsize
    bytes_tile_out = tm * dim * out_itemsize
    bytes_f32_work = tm * dim * 4 * 3
    bytes_params = 2 * dim * 4
    vmem_limit = (2 * (bytes_tile_in + bytes_tile_out) + bytes_f32_work
                  + 2 * bytes_params + (4 << 20))
    vmem_cap = min(int(vmem_bytes * 0.85), 100 << 20)
    vmem_limit = int(min(max(vmem_limit, 8 << 20), vmem_cap))

    cost = pl.CostEstimate(
        flops=7 * rows * dim,
        transcendentals=rows,
        bytes_accessed=rows * dim * (in_itemsize + out_itemsize) + 2 * dim * 4,
    )

    kernel = functools.partial(_layernorm_kernel, eps=eps)
    out2d = pl.pallas_call(
        kernel,
        out_shape=jax.ShapeDtypeStruct((rows, dim), orig_dtype),
        grid_spec=pltpu.PrefetchScalarGridSpec(
            num_scalar_prefetch=0,
            grid=grid,
            in_specs=[
                pl.BlockSpec((tm, dim), lambda i: (i, 0)),
                pl.BlockSpec((2, dim), lambda i: (0, 0)),  # resident params
            ],
            # NOTE: for D < 128 (e.g. the tiny demo) stores are lane-masked and
            # lane utilization is D/128; typical transformer D (multiple of
            # 128) is lane-dense and unaffected.
            out_specs=pl.BlockSpec((tm, dim), lambda i: (i, 0)),
        ),
        compiler_params=pltpu.CompilerParams(
            dimension_semantics=("parallel",),
            vmem_limit_bytes=vmem_limit,
        ),
        cost_estimate=cost,
    )(x2d, wb)

    # rows is exact (no padding), so no slice is needed before reshaping back.
    return out2d.reshape(out_shape_full)


def _reference(x, weight, bias, eps):
    xf = x.astype(jnp.float32)
    mean = xf.mean(axis=-1, keepdims=True)
    var = ((xf - mean) ** 2).mean(axis=-1, keepdims=True)
    ref = ((xf - mean) / jnp.sqrt(var + eps)) * weight + bias
    return ref.astype(x.dtype)


if __name__ == "__main__":
    key = jax.random.PRNGKey(0)
    k1, k2, k3, k4 = jax.random.split(key, 4)

    # Main check: 3D input, divisible row count.
    B, S, D = 2, 8, 32
    x = jax.random.normal(k1, (B, S, D), dtype=jnp.float32)
    weight = jnp.ones((D,), dtype=jnp.float32)
    bias = jnp.zeros((D,), dtype=jnp.float32)

    y = layer_norm(x, weight, bias, eps=1e-5)
    y = jax.block_until_ready(y)
    assert jnp.allclose(y, _reference(x, weight, bias, 1e-5), atol=1e-5, rtol=1e-5)

    # Ragged-row check (rows=15 not divisible by the 8-row sublane multiple)
    # with non-trivial affine params — exercises the masked last block.
    x_r = jax.random.normal(k2, (3, 5, D), dtype=jnp.float32)
    w_r = jax.random.normal(k3, (D,), dtype=jnp.float32)
    b_r = jax.random.normal(k4, (D,), dtype=jnp.float32)
    y_r = jax.block_until_ready(layer_norm(x_r, w_r, b_r, eps=1e-5))
    assert jnp.allclose(y_r, _reference(x_r, w_r, b_r, 1e-5), atol=1e-4, rtol=1e-4)

    # 2D input check: the reference module returns the unsqueezed 3D result.
    x_2d = jax.random.normal(k2, (4, D), dtype=jnp.float32)
    y_2d = jax.block_until_ready(layer_norm(x_2d, weight, bias, eps=1e-5))
    assert y_2d.shape == (1, 4, D)
    assert jnp.allclose(y_2d[0], _reference(x_2d, weight, bias, 1e-5),
                        atol=1e-5, rtol=1e-5)

    print("KERNEL_OK")
</pallas_src>

<mosaic_0001>
module attributes {stable_mosaic.version = 11 : i64} {
  func.func @_layernorm_kernel(%arg0: i32, %arg1: memref<8x32xf32, #tpu.memory_space<vmem>>, %arg2: memref<2x32xf32, #tpu.memory_space<vmem>>, %arg3: memref<8x32xf32, #tpu.memory_space<vmem>>) attributes {dimension_semantics = [#tpu.dimension_semantics<parallel>], iteration_bounds = array<i64: 2>, scalar_prefetch = 0 : i64, scratch_operands = 0 : i64, tpu.core_type = #tpu.core_type<tc>, window_params = [{transform_indices = @transform_0, window_bounds = array<i64: 8, 32>}, {pipeline_mode = #tpu.pipeline_mode<synchronous>, transform_indices = @transform_1, window_bounds = array<i64: 2, 32>}, {transform_indices = @transform_2, window_bounds = array<i64: 8, 32>}]} {
    %c0 = arith.constant 0 : index
    %c0_0 = arith.constant 0 : index
    %0 = vector.load %arg1[%c0, %c0_0] : memref<8x32xf32, #tpu.memory_space<vmem>>, vector<8x32xf32>
    %cst = arith.constant dense<0.000000e+00> : vector<8xf32>
    %1 = vector.multi_reduction <add>, %0, %cst [1] : vector<8x32xf32> to vector<8xf32>
    %2 = vector.shape_cast %1 : vector<8xf32> to vector<8x1xf32>
    %cst_1 = arith.constant 3.200000e+01 : f32
    %3 = vector.broadcast %cst_1 : f32 to vector<8x1xf32>
    %4 = arith.divf %2, %3 : vector<8x1xf32>
    %5 = vector.broadcast %4 : vector<8x1xf32> to vector<8x32xf32>
    %6 = arith.subf %0, %5 : vector<8x32xf32>
    %7 = arith.mulf %6, %6 : vector<8x32xf32>
    %cst_2 = arith.constant dense<0.000000e+00> : vector<8xf32>
    %8 = vector.multi_reduction <add>, %7, %cst_2 [1] : vector<8x32xf32> to vector<8xf32>
    %9 = vector.shape_cast %8 : vector<8xf32> to vector<8x1xf32>
    %cst_3 = arith.constant 3.200000e+01 : f32
    %10 = vector.broadcast %cst_3 : f32 to vector<8x1xf32>
    %11 = arith.divf %9, %10 : vector<8x1xf32>
    %cst_4 = arith.constant 9.99999974E-6 : f32
    %12 = vector.broadcast %cst_4 : f32 to vector<8x1xf32>
    %13 = arith.addf %11, %12 : vector<8x1xf32>
    %14 = math.rsqrt %13 : vector<8x1xf32>
    %c0_5 = arith.constant 0 : index
    %c0_6 = arith.constant 0 : index
    %15 = vector.load %arg2[%c0_5, %c0_6] : memref<2x32xf32, #tpu.memory_space<vmem>>, vector<1x32xf32>
    %c1 = arith.constant 1 : index
    %c0_7 = arith.constant 0 : index
    %16 = vector.load %arg2[%c1, %c0_7] : memref<2x32xf32, #tpu.memory_space<vmem>>, vector<1x32xf32>
    %17 = vector.broadcast %14 : vector<8x1xf32> to vector<8x32xf32>
    %18 = arith.mulf %6, %17 : vector<8x32xf32>
    %19 = vector.broadcast %15 : vector<1x32xf32> to vector<8x32xf32>
    %20 = arith.mulf %18, %19 : vector<8x32xf32>
    %21 = vector.broadcast %16 : vector<1x32xf32> to vector<8x32xf32>
    %22 = arith.addf %20, %21 : vector<8x32xf32>
    %c0_8 = arith.constant 0 : index
    %c0_9 = arith.constant 0 : index
    %23 = vector.load %arg3[%c0_8, %c0_9] : memref<8x32xf32, #tpu.memory_space<vmem>>, vector<8x32xf32>
    tpu.vector_store %arg3[%c0_8, %c0_9], %22 {strides = array<i32>} : memref<8x32xf32, #tpu.memory_space<vmem>>, vector<8x32xf32>,
    return
  }
  func.func @transform_0(%arg0: i32) -> (i32, i32) {
    %c0_i32 = arith.constant 0 : i32
    %c0_i32_0 = arith.constant 0 : i32
    return %arg0, %c0_i32 : i32, i32
  }
  func.func @transform_1(%arg0: i32) -> (i32, i32) {
    %c0_i32 = arith.constant 0 : i32
    %c0_i32_0 = arith.constant 0 : i32
    %c0_i32_1 = arith.constant 0 : i32
    return %c0_i32, %c0_i32_0 : i32, i32
  }
  func.func @transform_2(%arg0: i32) -> (i32, i32) {
    %c0_i32 = arith.constant 0 : i32
    %c0_i32_0 = arith.constant 0 : i32
    return %arg0, %c0_i32 : i32, i32
  }
}

</mosaic_0001>

<bundles_post_ra>
// kernel: tpu_custom_call.1
= control target key start
LH: loop header
LB: loop body
LE: loop exit
PB: predicated region body
PF: predicated region fallthrough
CT: control target
= control target key end

     0   :  { %7 = vsyncpa [#allocation3], 0  ;;  %s681_s0 = inlined_call_operand.hbm [shape: f32[16,32], index: 0, kind: input, shape index: {}]   ;;  %s682_s1 = inlined_call_operand.hbm [shape: f32[2,32], index: 1, kind: input, shape index: {}]   ;;  %s683_s2 = inlined_call_operand.hbm [shape: f32[16,32], index: 2, kind: output, shape index: {}]  }
   0x1   :  { %9 = vsyncpa [#allocation3 + $0x1], 0 }
   0x2   :  { %10 = vsyncpa [#allocation6], 0 }
   0x3   :  { %11 = vsyncpa [#allocation4], 0 }
   0x4   :  { %13 = vsyncpa [#allocation4 + $0x1], 0  ;;  %s512_s9 = smov 0   ;;  %s514_s10 = smov 0  }
   0x5   :  { %s516_s11 = smov 0   ;;  %s518_s12 = smov 0  }
   0x6 LB: > { %s533_s13 = sadd.s32 4294967295, %s492_s12   ;;  %s295_s14 = sadd.s32 4294967294, %s492_s12   ;;  %s492_s12 = sphi %s518_s12, %s706_s12   ;;  %s488_s11 = sphi %s516_s11, %s705_s11   ;;  %s484_s10 = sphi %s514_s10, %s704_s10   ;;  %s480_s9 = sphi %s512_s9, %s703_s9  }
   0x7   : > { %p39_p0 = scmp.ne.s32.totalorder %s484_s10, %s480_s9  ;;  %p684_p1 = scmp.eq.s32.totalorder %s533_s13, 0 }
   0x8   : > { %p90_p3 = scmp.eq.s32.totalorder %s295_s14, 1  ;;  %p296_p5 = scmp.ge.s32.totalorder %s492_s12, 1 }
   0x9   : > { %p542_p4 = por %p684_p1, %p39_p0  ;;  %p97_p7 = scmp.lt.s32.totalorder %s492_s12, 3 }
   0xa   : > { %p547_p6 = por %p90_p3, %p39_p0  ;;  %s494_s18 = smov [#allocation5]  }
   0xb   : > { %s688_s15 = scalar_select %p542_p4, 1, 0 }
   0xc   : > { %s689_s16 = scalar_select %p547_p6, 1, 0 }
   0xd   : > { %p552_p8 = pnand %p296_p5, %p97_p7  ;;  %s110_s19 = sshll.u32 %s494_s18, 4  ;;  %s111_s19 = int_to_ptr.vmem [resolvable:$true] %s110_s19 }
   0xe   : > { %s560_s20 = sadd.s32 1, %s492_s12   ;;  %s26_s24 = sadd.s32 1, %s488_s11 }
   0xf   : > { %s690_s17 = scalar_select %p552_p8, 1, 0 }
  0x10   : > { %p319_p10 = pneg %p552_p8  ;;  %s23_s22 = ssub.s32 %s492_s12, %s560_s20 }
  0x11   : > { %p570_p12 = scmp.eq.s32.totalorder %s23_s22, 0  ;;  %p33_p13 = scmp.ne.s32.totalorder %s488_s11, %s484_s10 }
  0x12   : > { %p564_p11 = pnand %p319_p10, %p684_p1  ;;  %s381_s25 = scalar_lea.vmem %s111_s19, 32 }
  0x13   : > { %p382_p3 = scmp.ne.s32.totalorder %s111_s19, %s381_s25  ;;  %p389_p9 = scmp.lt.s32.totalorder %s111_s19, %s111_s19 }
  0x14   : > { %p372_p0 = pneg %p564_p11  ;;  %p390_p2 = scmp.lt.s32.totalorder %s381_s25, %s381_s25 }
  0x16   : > { %p384_p5 = pnand %p382_p3, %p372_p0  ;;  %p391_p10 = por %p390_p2, %p389_p9 }
  0x18   : > { %p385_p7 = pneg %p384_p5 }
  0x1a   : > { %p392_p1 = pnand %p391_p10, %p385_p7 }
  0x1c   : > { %395 = shalt.err (!%p392_p1)
}
  0x1d   : > { %322 = dma.hbm_to_vmem [thread:$0]  (!%p564_p11), %s682_s1, 32, %s111_s19, [#allocation6]  }
  0x1e   : > { %s587_s28 = scalar_select %p570_p12, %s488_s11, %s26_s24  }
  0x1f   : > { %p34_p1 = scmp.eq.s32.totalorder %s492_s12, 0  ;;  %p693_p2 = scmp.eq.s32.totalorder %s533_s13, 1 }
  0x20   : > { %p332_p0 = scmp.lt.s32.totalorder %s492_s12, 2  ;;  %s121_s30 = sand.u32 1, %s488_s11  }
  0x21   : > { %p595_p9 = por %p693_p2, %p33_p13  ;;  %p35_p3 = por %p34_p1, %p33_p13 }
  0x22   : > { %s299_s3 = sshll.u32 %s121_s30, 3  ;;  %s300_s4 = sshll.u32 %s492_s12, 7 }
  0x23   : > { %s694_s29 = scalar_select %p595_p9, 1, 0 }
  0x24   : > { %s608_s7 = scalar_lea.hbm %s681_s0, %s300_s4  ;;  %s125_s8 = scalar_lea.vmem [#allocation2], %s299_s3 }
  0x25   : > { %s132_s14 = sshll.u32 %s125_s8, 4  ;;  %p610_p11 = pnand %p332_p0, %p35_p3  ;;  %s133_s14 = int_to_ptr.vmem [resolvable:$true] %s132_s14 }
  0x26   : > { %s122_s19 = scalar_lea.sflag [#allocation3], %s121_s30  ;;  %s396_s21 = scalar_lea.hbm %s608_s7, 128 }
  0x27   : > { %p397_p12 = scmp.ne.s32.totalorder %s608_s7, %s396_s21  ;;  %p398_p13 = pneg %p610_p11 }
  0x28   : > { %s401_s24 = scalar_lea.hbm %s681_s0, 256  ;;  %p402_p10 = scmp.lt.s32.totalorder %s608_s7, %s681_s0 }
  0x29   : > { %p399_p5 = pnand %p398_p13, %p397_p12  ;;  %p403_p1 = scmp.lt.s32.totalorder %s401_s24, %s396_s21 }
  0x2b   : > { %p400_p7 = pneg %p399_p5  ;;  %p404_p2 = por %p403_p1, %p402_p10 }
  0x2d   : > { %p405_p0 = pnand %p404_p2, %p400_p7 }
  0x2f   : > { %408 = shalt.err (!%p405_p0)
}
  0x30   : > { %s409_s27 = scalar_lea.vmem %s133_s14, 128  ;;  %s495_s30 = smov [#allocation2]  }
  0x31   : > { %p410_p3 = scmp.ne.s32.totalorder %s133_s14, %s409_s27  ;;  %s414_s3 = sshll.u32 %s495_s30, 4  ;;  %s415_s3 = int_to_ptr.vmem [resolvable:$false] %s414_s3 }
  0x32   : > { %s416_s4 = scalar_lea.vmem %s415_s3, 256  ;;  %p417_p12 = scmp.lt.s32.totalorder %s133_s14, %s415_s3 }
  0x33   : > { %p412_p6 = pnand %p410_p3, %p398_p13  ;;  %p418_p5 = scmp.lt.s32.totalorder %s416_s4, %s409_s27 }
  0x35   : > { %p413_p9 = pneg %p412_p6  ;;  %p419_p4 = por %p418_p5, %p417_p12 }
  0x37   : > { %p420_p8 = pnand %p419_p4, %p413_p9 }
  0x39   : > { %423 = shalt.err (!%p420_p8)
}
  0x3a   : > { %326 = dma.hbm_to_vmem [thread:$0]  (!%p610_p11), %s608_s7, 128, %s133_s14, %s122_s19  }
  0x3b   : > { %p696_p7 = scmp.ne.s32.totalorder %s690_s17, 0 }
  0x3c   : > { %s631_s5 = sand.u32 (!%p696_p7), 1, %s484_s10   ;;  %p697_p6 = scmp.ne.s32.totalorder (!%p696_p7), %s688_s15, 0 }
  0x3d   : > { %141 = sbr.rel (%p696_p7) target bundleno = 392 (0x188), region = 28  ;;  %s302_s6 = sshll.u32 (!%p696_p7), %s631_s5, 3 }
  0x3e   : > { %s144_s8 = scalar_lea.sflag (!%p696_p7), [#allocation3], %s631_s5  ;;  %s147_s21 = scalar_lea.vmem (!%p696_p7), [#allocation2], %s302_s6 }
  0x42   : > { %467 = dma.done.wait (%p697_p6), %s144_s8, 128  }
  0x43   : > { %469 = vsyncadd (%p697_p6), %s144_s8, 4294967168  ;;  %p698_p4 = scmp.eq.s32.totalorder %s533_s13, 0 }
  0x45   : > { %471 = dma.done.wait (%p698_p4), [#allocation6], 32   ;;  %p699_p8 = pmov %p698_p4 }
  0x46   : > { %vm173_vm0 = vcmask 261120   ;;  %v172_v0 = vld [vmem:[%s147_s21] sm:$0xff]  ;;  %v305_v11 = vld [vmem:[#allocation5] ss:$0 sm:$0xff]  ;;  %v306_v13 = vld [vmem:[#allocation5 + $0x1] ss:$0 sm:$0xff] }
  0x47   : > { %473 = vsyncadd (%p699_p8), [#allocation6], 4294967264  ;;  %v174_v1 = vsel %vm173_vm0, %v172_v0, 0.0  ;;  %s308_s15 = sshll.u32 %s533_s13, 7  ;;  %s171_s17 = scalar_lea.vmem [#allocation7], %s302_s6 }
  0x48   : > { %175 = vadd.xlane.f32.xlu0 %v174_v1  ;;  %s215_s7 = sshll.u32 %s171_s17, 4  ;;  %s213_s19 = scalar_lea.hbm %s683_s2, %s308_s15  ;;  %s216_s7 = int_to_ptr.vmem [resolvable:$true] %s215_s7 }
  0x49   : > { %s202_s22 = scalar_lea.sflag [#allocation4], %s631_s5  ;;  %s424_s23 = scalar_lea.vmem %s216_s7, 128 }
  0x4a   : > { %p425_p9 = scmp.ne.s32.totalorder %s216_s7, %s424_s23  ;;  %p700_p11 = scmp.ne.s32.totalorder %s694_s29, 0 }
  0x4b   : > { %s496_s24 = smov [#allocation7]  }
  0x4c   : > { %p426_p13 = pnand %p425_p9, %p700_p11  ;;  %s428_s25 = sshll.u32 %s496_s24, 4  ;;  %s429_s25 = int_to_ptr.vmem [resolvable:$false] %s428_s25 }
  0x4d   : > { %s430_s13 = scalar_lea.vmem %s429_s25, 256  ;;  %p431_p1 = scmp.lt.s32.totalorder %s216_s7, %s429_s25 }
  0x4e   : > { %p427_p10 = pneg %p426_p13  ;;  %p432_p2 = scmp.lt.s32.totalorder %s430_s13, %s424_s23 }
  0x50   : > { %p433_p0 = por %p432_p2, %p431_p1 }
  0x52   : > { %p434_p3 = pnand %p433_p0, %p427_p10 }
  0xd1   : > { %v176_v2 = vpop.xlane.xlu0 %175 }
  0xd2   : > { %v178_v3 = vmul.f32 0.03125, %v176_v2 }
  0xd4   : > { %v179_v4 = vsub.f32 %v172_v0, %v178_v3 }
  0xd6   : > { %v180_v5 = vmul.f32 %v179_v4, %v179_v4 }
  0xd8   : > { %v181_v6 = vsel %vm173_vm0, %v180_v5, 0.0 }
  0xd9   : > { %182 = vadd.xlane.f32.xlu0 %v181_v6 }
 0x162   : > { %v183_v7 = vpop.xlane.xlu0 %182 }
 0x163   : > { %v184_v8 = vmul.f32 0.03125, %v183_v7 }
 0x165   : > { %v185_v9 = vadd.f32 1e-05, %v184_v8 }
 0x167   : > { %368 = vrsqrt.f32 %v185_v9 }
 0x174   : > { %v369_v10 = vpop.eup %368 }
 0x175   : > { %v189_v12 = vmul.f32 %v369_v10, %v179_v4 }
 0x177   : > { %v194_v14 = vmul.f32 %v305_v11, %v189_v12 }
 0x179   : > { %v199_v15 = vadd.f32 %v306_v13, %v194_v14 }
 0x17b   : > { %200 = vst.msk [vmem:[%s171_s17] sm:$0xff] %vm173_vm0, %v199_v15 }
 0x17c   : > { %437 = shalt.err (!%p434_p3)
}
 0x17d   : > { %s438_s26 = scalar_lea.hbm %s213_s19, 128  ;;  %s442_s3 = scalar_lea.hbm %s683_s2, 256 }
 0x17e   : > { %p439_p12 = scmp.ne.s32.totalorder %s213_s19, %s438_s26  ;;  %p443_p6 = scmp.lt.s32.totalorder %s213_s19, %s683_s2 }
 0x17f   : > { %p444_p4 = scmp.lt.s32.totalorder %s442_s3, %s438_s26 }
 0x180   : > { %p440_p5 = pnand %p439_p12, %p700_p11 }
 0x181   : > { %p445_p8 = por %p444_p4, %p443_p6 }
 0x182   : > { %p441_p7 = pneg %p440_p5 }
 0x184   : > { %p446_p9 = pnand %p445_p8, %p441_p7 }
 0x186   : > { %449 = shalt.err (!%p446_p9)
}
 0x187   : > { %317 = dma.vmem_to_hbm [thread:$0]  (%p700_p11), %s216_s7, 128, %s213_s19, %s202_s22  }
 0x188 PF: > { %s227_s6 = sand.u32 1, %s480_s9   ;;  %p701_p13 = scmp.ne.s32.totalorder %s689_s16, 0 }
 0x189   : > { %p702_p10 = scmp.ge.s32.totalorder %s492_s12, 2  ;;  %s228_s8 = scalar_lea.sflag [#allocation4], %s227_s6 }
 0x18b   : > { %p328_p1 = pnand %p702_p10, %p701_p13 }
 0x18d   : > { %p329_p2 = pneg %p328_p1 }
 0x18f   : > { %475 = dma.done.wait (%p329_p2), %s228_s8, 128  }
 0x190   : > { %477 = vsyncadd (%p329_p2), %s228_s8, 4294967168  ;;  %p16_p0 = scmp.ge.s32.totalorder %s560_s20, 4   ;;  %s703_s9 = smov %s484_s10 }
 0x191   : > { %s704_s10 = smov %s488_s11  ;;  %s705_s11 = smov %s587_s28 }
 0x192   : > { %s706_s12 = smov %s560_s20  ;;  %18 = sbr.rel (!%p16_p0) target bundleno = 6 (0x6), region = 77 }
 0x197   :  { %233 = vsyncpa [#allocation3], 1 }
 0x198   :  { %235 = vsyncpa [#allocation3 + $0x1], 1 }
 0x199   :  { %236 = vsyncpa [#allocation6], 1 }
 0x19a   :  { %237 = vsyncpa [#allocation4], 1 }
 0x19b   :  { %239 = vsyncpa [#allocation4 + $0x1], 1 }

</bundles_post_ra>
